<compile_context>
chip_gen: v7x
topology: tpu7x:2x2x1
jax: 0.10.0
libtpu: 0.0.40
codegen_flags: <defaults>
</compile_context>

<pallas_src>
import functools

import jax
import jax.numpy as jnp
from jax.experimental import pallas as pl
from jax.experimental.pallas import tpu as pltpu

HP = 128   # hidden dim zero-padded to one full lane width
KP = 128   # layer-1 contraction dim (S + A) zero-padded to one full lane width


def _round_up(x, m):
    return (x + m - 1) // m * m


def ddpg_value_kernel(s_ref, a_ref, w1_ref, b1_ref, w2_ref, b2_ref,
                      w3_ref, b3_ref, o_ref, x_ref):
    """One batch tile: q = relu(relu([s|a]@W1 + b1) @ W2 + b2) @ w3 + b3."""
    S = s_ref.shape[1]
    A = a_ref.shape[1]
    TB = x_ref.shape[0]

    # ---- In-VMEM concat (one layer-1 matmul instead of a split pair). ----
    # Lane-slice stores ride in otherwise-idle vst slots; the pad lanes are
    # re-zeroed every step (cheap) so uninitialized VMEM can never leak NaNs.
    x_ref[:, S + A:] = jnp.zeros((TB, KP - (S + A)), jnp.float32)
    x_ref[:, :S] = s_ref[...].astype(jnp.float32)
    x_ref[:, S:S + A] = a_ref[...].astype(jnp.float32)

    # ---- Layer 1: bf16 MXU operands, f32 accumulation, f32 elementwise. ----
    h1 = jnp.dot(x_ref[...].astype(jnp.bfloat16), w1_ref[...],
                 preferred_element_type=jnp.float32) + b1_ref[...]
    h1 = jnp.maximum(h1, 0.0)                                  # [TB, HP]

    # ---- Layer 2 ----
    h2 = jnp.dot(h1.astype(jnp.bfloat16), w2_ref[...],
                 preferred_element_type=jnp.float32) + b2_ref[...]
    h2 = jnp.maximum(h2, 0.0)                                  # [TB, HP]

    # ---- Layer 3: N=1 output -> VPU multiply + lane reduction (no MXU). ----
    # Padded columns of w3 are zero, contribute nothing. b3 is an SMEM scalar.
    q = jnp.sum(h2 * w3_ref[...], axis=-1, keepdims=True) + b3_ref[0, 0]
    o_ref[...] = q.astype(o_ref.dtype)                          # [TB, 1]


@functools.partial(jax.jit, static_argnames=("block_b",))
def ddpg_forward(s, a, w1p, b1, w2p, b2, w3row, b3, *, block_b=4096):
    """Q(s, a) with padded parameters (W1/W2 bf16). Returns [B, 1] float32."""
    B, S = s.shape
    A = a.shape[1]

    # Batch tile: large enough to amortize per-step overhead (~0.35us/step),
    # but capped so large batches split into >= 2 tiles (v7x has 2 TCs fed via
    # the "parallel" batch axis), and 8-aligned for sublane tiling.
    TB = min(block_b, _round_up(pl.cdiv(B, 2), 8))
    TB = _round_up(max(TB, 8), 8)
    num_tiles = pl.cdiv(B, TB)
    B_pad = num_tiles * TB
    if B_pad != B:
        s = jnp.pad(s, ((0, B_pad - B), (0, 0)))
        a = jnp.pad(a, ((0, B_pad - B), (0, 0)))

    const = lambda i: (0, 0)  # weights/biases stay VMEM-resident across steps
    grid_spec = pltpu.PrefetchScalarGridSpec(
        num_scalar_prefetch=0,
        grid=(num_tiles,),
        in_specs=[
            pl.BlockSpec((TB, S), lambda i: (i, 0)),              # s tile
            pl.BlockSpec((TB, A), lambda i: (i, 0)),              # a tile
            pl.BlockSpec((KP, HP), const),                        # W1 (bf16, K,H padded)
            pl.BlockSpec((1, HP), const),                         # b1 (f32)
            pl.BlockSpec((HP, HP), const),                        # W2 (bf16)
            pl.BlockSpec((1, HP), const),                         # b2 (f32)
            pl.BlockSpec((1, HP), const),                         # w3 row (f32)
            pl.BlockSpec(memory_space=pltpu.MemorySpace.SMEM),    # b3 scalar
        ],
        out_specs=pl.BlockSpec((TB, 1), lambda i: (i, 0)),
        scratch_shapes=[pltpu.VMEM((TB, KP), jnp.float32)],       # concat buffer
    )
    q_pad = pl.pallas_call(
        ddpg_value_kernel,
        out_shape=jax.ShapeDtypeStruct((B_pad, 1), jnp.float32),
        grid_spec=grid_spec,
        compiler_params=pltpu.CompilerParams(
            dimension_semantics=("parallel",),      # shard tiles over TCs (v7x)
            vmem_limit_bytes=32 * 1024 * 1024,      # ~14 MiB used at TB=4096
        ),
    )(s, a, w1p, b1, w2p, b2, w3row, b3)
    return q_pad[:B]


def init_linear(key, fan_in, fan_out):
    """PyTorch-style Linear init: U(-1/sqrt(fan_in), 1/sqrt(fan_in)).
    Weight returned as [fan_in, fan_out] so forward is x @ W + b."""
    kw, kb = jax.random.split(key)
    bound = 1.0 / jnp.sqrt(jnp.float32(fan_in))
    w = jax.random.uniform(kw, (fan_in, fan_out), jnp.float32, -bound, bound)
    b = jax.random.uniform(kb, (1, fan_out), jnp.float32, -bound, bound)
    return w, b


def prepare_padded_params(w1, b1, w2, b2, w3, b3):
    """Zero-pad K (=S+A) and hidden dims to 128 lanes; MXU weights -> bf16."""
    K, H = w1.shape
    w1p = jnp.zeros((KP, HP), jnp.float32).at[:K, :H].set(w1).astype(jnp.bfloat16)
    b1p = jnp.zeros((1, HP), jnp.float32).at[:, :H].set(b1)
    w2p = jnp.zeros((HP, HP), jnp.float32).at[:H, :H].set(w2).astype(jnp.bfloat16)
    b2p = jnp.zeros((1, HP), jnp.float32).at[:, :H].set(b2)
    w3row = jnp.zeros((1, HP), jnp.float32).at[:, :H].set(w3[:, 0][None, :])
    b3p = b3.reshape(1, 1).astype(jnp.float32)
    return w1p, b1p, w2p, b2p, w3row, b3p


if __name__ == "__main__":
    # Small, forward-consistent shapes (value_module of DDPGNet).
    batch = 8
    state_size = 8
    action_size = 4
    layer_size = 32           # params['layer_size']

    key = jax.random.PRNGKey(0)
    ks, ka, k1, k2, k3 = jax.random.split(key, 5)

    s = jax.random.normal(ks, (batch, state_size), jnp.float32)
    a = jax.random.normal(ka, (batch, action_size), jnp.float32)

    w1, b1 = init_linear(k1, state_size + action_size, layer_size)
    w2, b2 = init_linear(k2, layer_size, layer_size)
    w3, b3 = init_linear(k3, layer_size, 1)

    padded = prepare_padded_params(w1, b1, w2, b2, w3, b3)

    q = ddpg_forward(s, a, *padded)
    q = jax.block_until_ready(q)

    # Pure-JAX f32 reference (unpadded weights). bf16 MXU operands => not
    # bit-exact; ~1e-2 relative error is expected and acceptable for a critic.
    x = jnp.concatenate([s, a], axis=1)
    h1 = jnp.maximum(x @ w1 + b1, 0.0)
    h2 = jnp.maximum(h1 @ w2 + b2, 0.0)
    q_ref = h2 @ w3 + b3

    assert q.shape == (batch, 1)
    assert jnp.allclose(q, q_ref, atol=2e-2, rtol=2e-2), (
        f"max abs err {jnp.max(jnp.abs(q - q_ref))}")
    print("KERNEL_OK")
</pallas_src>

<mosaic_0001>
module attributes {stable_mosaic.version = 11 : i64} {
  func.func @ddpg_value_kernel(%arg0: i32, %arg1: memref<8x8xf32, #tpu.memory_space<vmem>>, %arg2: memref<8x4xf32, #tpu.memory_space<vmem>>, %arg3: memref<128x128xbf16, #tpu.memory_space<vmem>>, %arg4: memref<1x128xf32, #tpu.memory_space<vmem>>, %arg5: memref<128x128xbf16, #tpu.memory_space<vmem>>, %arg6: memref<1x128xf32, #tpu.memory_space<vmem>>, %arg7: memref<1x128xf32, #tpu.memory_space<vmem>>, %arg8: memref<1x1xf32, #tpu.memory_space<smem>>, %arg9: memref<8x1xf32, #tpu.memory_space<vmem>>, %arg10: memref<8x128xf32, #tpu.memory_space<vmem>>) attributes {dimension_semantics = [#tpu.dimension_semantics<parallel>], iteration_bounds = array<i64: 1>, scalar_prefetch = 0 : i64, scratch_operands = 1 : i64, tpu.core_type = #tpu.core_type<tc>, window_params = [{transform_indices = @transform_0, window_bounds = array<i64: 8, 8>}, {transform_indices = @transform_1, window_bounds = array<i64: 8, 4>}, {pipeline_mode = #tpu.pipeline_mode<synchronous>, transform_indices = @transform_2, window_bounds = array<i64: 128, 128>}, {pipeline_mode = #tpu.pipeline_mode<synchronous>, transform_indices = @transform_3, window_bounds = array<i64: 1, 128>}, {pipeline_mode = #tpu.pipeline_mode<synchronous>, transform_indices = @transform_4, window_bounds = array<i64: 128, 128>}, {pipeline_mode = #tpu.pipeline_mode<synchronous>, transform_indices = @transform_5, window_bounds = array<i64: 1, 128>}, {pipeline_mode = #tpu.pipeline_mode<synchronous>, transform_indices = @transform_6, window_bounds = array<i64: 1, 128>}, {transform_indices = @transform_7, window_bounds = array<i64: 1, 1>}, {transform_indices = @transform_8, window_bounds = array<i64: 8, 1>}]} {
    %cst = arith.constant 0.000000e+00 : f32
    %0 = vector.broadcast %cst : f32 to vector<8x116xf32>
    %c0 = arith.constant 0 : index
    %c12 = arith.constant 12 : index
    %1 = vector.load %arg10[%c0, %c12] : memref<8x128xf32, #tpu.memory_space<vmem>>, vector<8x116xf32>
    tpu.vector_store %arg10[%c0, %c12], %0 {strides = array<i32>} : memref<8x128xf32, #tpu.memory_space<vmem>>, vector<8x116xf32>,
    %c0_0 = arith.constant 0 : index
    %c0_1 = arith.constant 0 : index
    %2 = vector.load %arg1[%c0_0, %c0_1] : memref<8x8xf32, #tpu.memory_space<vmem>>, vector<8x8xf32>
    %c0_2 = arith.constant 0 : index
    %c0_3 = arith.constant 0 : index
    %3 = vector.load %arg10[%c0_2, %c0_3] : memref<8x128xf32, #tpu.memory_space<vmem>>, vector<8x8xf32>
    tpu.vector_store %arg10[%c0_2, %c0_3], %2 {strides = array<i32>} : memref<8x128xf32, #tpu.memory_space<vmem>>, vector<8x8xf32>,
    %c0_4 = arith.constant 0 : index
    %c0_5 = arith.constant 0 : index
    %4 = vector.load %arg2[%c0_4, %c0_5] : memref<8x4xf32, #tpu.memory_space<vmem>>, vector<8x4xf32>
    %c0_6 = arith.constant 0 : index
    %c8 = arith.constant 8 : index
    %5 = vector.load %arg10[%c0_6, %c8] : memref<8x128xf32, #tpu.memory_space<vmem>>, vector<8x4xf32>
    tpu.vector_store %arg10[%c0_6, %c8], %4 {strides = array<i32>} : memref<8x128xf32, #tpu.memory_space<vmem>>, vector<8x4xf32>,
    %c0_7 = arith.constant 0 : index
    %c0_8 = arith.constant 0 : index
    %6 = vector.load %arg10[%c0_7, %c0_8] : memref<8x128xf32, #tpu.memory_space<vmem>>, vector<8x128xf32>
    %7 = arith.truncf %6 : vector<8x128xf32> to vector<8x128xbf16>
    %c0_9 = arith.constant 0 : index
    %c0_10 = arith.constant 0 : index
    %8 = vector.load %arg3[%c0_9, %c0_10] : memref<128x128xbf16, #tpu.memory_space<vmem>>, vector<128x128xbf16>
    %cst_11 = arith.constant dense<0.000000e+00> : vector<8x128xf32>
    %9 = tpu.matmul %7, %8, %cst_11 {dimension_numbers = #tpu.dot_dimension_numbers<[1], [0], [0], [1], [0, 0, 1, 1], [], []>} : vector<8x128xbf16>, vector<128x128xbf16>, vector<8x128xf32> -> vector<8x128xf32>
    %c0_12 = arith.constant 0 : index
    %c0_13 = arith.constant 0 : index
    %10 = vector.load %arg4[%c0_12, %c0_13] : memref<1x128xf32, #tpu.memory_space<vmem>>, vector<1x128xf32>
    %11 = vector.broadcast %10 : vector<1x128xf32> to vector<8x128xf32>
    %12 = arith.addf %9, %11 : vector<8x128xf32>
    %cst_14 = arith.constant 0.000000e+00 : f32
    %13 = vector.broadcast %cst_14 : f32 to vector<8x128xf32>
    %14 = arith.maximumf %12, %13 : vector<8x128xf32>
    %15 = arith.truncf %14 : vector<8x128xf32> to vector<8x128xbf16>
    %c0_15 = arith.constant 0 : index
    %c0_16 = arith.constant 0 : index
    %16 = vector.load %arg5[%c0_15, %c0_16] : memref<128x128xbf16, #tpu.memory_space<vmem>>, vector<128x128xbf16>
    %cst_17 = arith.constant dense<0.000000e+00> : vector<8x128xf32>
    %17 = tpu.matmul %15, %16, %cst_17 {dimension_numbers = #tpu.dot_dimension_numbers<[1], [0], [0], [1], [0, 0, 1, 1], [], []>} : vector<8x128xbf16>, vector<128x128xbf16>, vector<8x128xf32> -> vector<8x128xf32>
    %c0_18 = arith.constant 0 : index
    %c0_19 = arith.constant 0 : index
    %18 = vector.load %arg6[%c0_18, %c0_19] : memref<1x128xf32, #tpu.memory_space<vmem>>, vector<1x128xf32>
    %19 = vector.broadcast %18 : vector<1x128xf32> to vector<8x128xf32>
    %20 = arith.addf %17, %19 : vector<8x128xf32>
    %cst_20 = arith.constant 0.000000e+00 : f32
    %21 = vector.broadcast %cst_20 : f32 to vector<8x128xf32>
    %22 = arith.maximumf %20, %21 : vector<8x128xf32>
    %c0_21 = arith.constant 0 : index
    %c0_22 = arith.constant 0 : index
    %23 = vector.load %arg7[%c0_21, %c0_22] : memref<1x128xf32, #tpu.memory_space<vmem>>, vector<1x128xf32>
    %24 = vector.broadcast %23 : vector<1x128xf32> to vector<8x128xf32>
    %25 = arith.mulf %22, %24 : vector<8x128xf32>
    %cst_23 = arith.constant dense<0.000000e+00> : vector<8xf32>
    %26 = vector.multi_reduction <add>, %25, %cst_23 [1] : vector<8x128xf32> to vector<8xf32>
    %27 = vector.shape_cast %26 : vector<8xf32> to vector<8x1xf32>
    %c0_24 = arith.constant 0 : index
    %c0_25 = arith.constant 0 : index
    %28 = memref.load %arg8[%c0_24, %c0_25] : memref<1x1xf32, #tpu.memory_space<smem>>
    %29 = vector.broadcast %28 : f32 to vector<8x1xf32>
    %30 = arith.addf %27, %29 : vector<8x1xf32>
    %c0_26 = arith.constant 0 : index
    %c0_27 = arith.constant 0 : index
    %31 = vector.load %arg9[%c0_26, %c0_27] : memref<8x1xf32, #tpu.memory_space<vmem>>, vector<8x1xf32>
    tpu.vector_store %arg9[%c0_26, %c0_27], %30 {strides = array<i32>} : memref<8x1xf32, #tpu.memory_space<vmem>>, vector<8x1xf32>,
    return
  }
  func.func @transform_0(%arg0: i32) -> (i32, i32) {
    %c0_i32 = arith.constant 0 : i32
    %c0_i32_0 = arith.constant 0 : i32
    return %arg0, %c0_i32 : i32, i32
  }
  func.func @transform_1(%arg0: i32) -> (i32, i32) {
    %c0_i32 = arith.constant 0 : i32
    %c0_i32_0 = arith.constant 0 : i32
    return %arg0, %c0_i32 : i32, i32
  }
  func.func @transform_2(%arg0: i32) -> (i32, i32) {
    %c0_i32 = arith.constant 0 : i32
    %c0_i32_0 = arith.constant 0 : i32
    %c0_i32_1 = arith.constant 0 : i32
    return %c0_i32, %c0_i32_0 : i32, i32
  }
  func.func @transform_3(%arg0: i32) -> (i32, i32) {
    %c0_i32 = arith.constant 0 : i32
    %c0_i32_0 = arith.constant 0 : i32
    %c0_i32_1 = arith.constant 0 : i32
    return %c0_i32, %c0_i32_0 : i32, i32
  }
  func.func @transform_4(%arg0: i32) -> (i32, i32) {
    %c0_i32 = arith.constant 0 : i32
    %c0_i32_0 = arith.constant 0 : i32
    %c0_i32_1 = arith.constant 0 : i32
    return %c0_i32, %c0_i32_0 : i32, i32
  }
  func.func @transform_5(%arg0: i32) -> (i32, i32) {
    %c0_i32 = arith.constant 0 : i32
    %c0_i32_0 = arith.constant 0 : i32
    %c0_i32_1 = arith.constant 0 : i32
    return %c0_i32, %c0_i32_0 : i32, i32
  }
  func.func @transform_6(%arg0: i32) -> (i32, i32) {
    %c0_i32 = arith.constant 0 : i32
    %c0_i32_0 = arith.constant 0 : i32
    %c0_i32_1 = arith.constant 0 : i32
    return %c0_i32, %c0_i32_0 : i32, i32
  }
  func.func @transform_7(%arg0: i32) -> (i32, i32) {
    %c0_i32 = arith.constant 0 : i32
    %c0_i32_0 = arith.constant 0 : i32
    %c0_i32_1 = arith.constant 0 : i32
    return %c0_i32, %c0_i32_0 : i32, i32
  }
  func.func @transform_8(%arg0: i32) -> (i32, i32) {
    %c0_i32 = arith.constant 0 : i32
    %c0_i32_0 = arith.constant 0 : i32
    return %arg0, %c0_i32 : i32, i32
  }
}

</mosaic_0001>

<bundles_post_ra>
// kernel: ddpg_forward.1
= control target key start
LH: loop header
LB: loop body
LE: loop exit
PB: predicated region body
PF: predicated region fallthrough
CT: control target
= control target key end

     0   :  { %14 = vsyncpa [#allocation5], 0  ;;  %s564_s0 = inlined_call_operand.vmem [shape: f32[8,8], index: 0, kind: input, shape index: {}]   ;;  %s565_s1 = inlined_call_operand.vmem [shape: f32[8,4], index: 1, kind: input, shape index: {}]   ;;  %s566_s2 = inlined_call_operand.hbm [shape: bf16[128,128], index: 2, kind: input, shape index: {}]   ;;  %s567_s3 = inlined_call_operand.vmem [shape: f32[1,128], index: 3, kind: input, shape index: {}]   ;;  %s568_s4 = inlined_call_operand.hbm [shape: bf16[128,128], index: 4, kind: input, shape index: {}]   ;;  %s569_s5 = inlined_call_operand.vmem [shape: f32[1,128], index: 5, kind: input, shape index: {}]   ;;  %s570_s6 = inlined_call_operand.vmem [shape: f32[1,128], index: 6, kind: input, shape index: {}]   ;;  %s571_s7 = inlined_call_operand.<no memory space> [shape: f32[1,1], index: 7, kind: input, shape index: {}]   ;;  %s572_s8 = inlined_call_operand.vmem [shape: f32[8,1], index: 8, kind: output, shape index: {}]  }
   0x1   :  { %15 = vsyncpa [#allocation7], 0  ;;  %s467_s27 = smov [#allocation4]   ;;  %s419_s9 = scalar_lea.hbm %s566_s2, 1024 }
   0x2   :  { %s25_s28 = sshll.u32 %s467_s27, 4  ;;  %p420_p0 = scmp.ne.s32.totalorder %s566_s2, %s419_s9  ;;  %s26_s28 = int_to_ptr.vmem [resolvable:$true] %s25_s28 }
   0x3   :  { %p423_p1 = scmp.lt.u32.totalorder %s419_s9, %s566_s2 }
   0x5   :  { %p425_p2 = pnand %p423_p1, %p420_p0 }
   0x7   :  { %428 = shalt.err (!%p425_p2)
}
   0x8   :  { %s429_s14 = scalar_lea.vmem %s26_s28, 1024  ;;  %p434_p4 = scmp.lt.s32.totalorder %s26_s28, %s26_s28 }
   0x9   :  { %p430_p3 = scmp.ne.s32.totalorder %s26_s28, %s429_s14  ;;  %p435_p5 = scmp.lt.s32.totalorder %s429_s14, %s429_s14 }
   0xb   :  { %p436_p6 = por %p435_p5, %p434_p4 }
   0xd   :  { %p437_p7 = pnand %p436_p6, %p430_p3 }
   0xf   :  { %440 = shalt.err (!%p437_p7)
}
  0x10   :  { %s468_s15 = smov 64   ;;  %s469_s16 = smov 4  }
  0x11   :  { %31 = dma.hbm_to_vmem [thread:$0]  %s566_s2, 1024, %s26_s28, [#allocation5], %s468_s15, %s468_s15, %s469_s16  }
  0x12   :  { %s470_s19 = smov [#allocation6]   ;;  %s441_s23 = scalar_lea.hbm %s568_s4, 1024 }
  0x13   :  { %s39_s20 = sshll.u32 %s470_s19, 4  ;;  %p442_p8 = scmp.ne.s32.totalorder %s568_s4, %s441_s23  ;;  %s40_s20 = int_to_ptr.vmem [resolvable:$true] %s39_s20 }
  0x14   :  { %p445_p9 = scmp.lt.u32.totalorder %s441_s23, %s568_s4 }
  0x16   :  { %p447_p10 = pnand %p445_p9, %p442_p8 }
  0x18   :  { %450 = shalt.err (!%p447_p10)
}
  0x19   :  { %s451_s29 = scalar_lea.vmem %s40_s20, 1024  ;;  %p456_p12 = scmp.lt.s32.totalorder %s40_s20, %s40_s20 }
  0x1a   :  { %p452_p11 = scmp.ne.s32.totalorder %s40_s20, %s451_s29  ;;  %p457_p13 = scmp.lt.s32.totalorder %s451_s29, %s451_s29 }
  0x1c   :  { %p458_p0 = por %p457_p13, %p456_p12 }
  0x1e   :  { %p459_p1 = pnand %p458_p0, %p452_p11 }
  0x20   :  { %462 = shalt.err (!%p459_p1)
}
  0x21   :  { %45 = dma.hbm_to_vmem [thread:$0]  %s568_s4, 1024, %s40_s20, [#allocation7], %s468_s15, %s468_s15, %s469_s16  }
  0x22   :  { %463 = dma.done.wait [#allocation5], 1024  }
  0x23   :  { %464 = vsyncadd [#allocation5], 4294966272 }
  0x24   :  { %465 = dma.done.wait [#allocation7], 1024  }
  0x25   :  { %466 = vsyncadd [#allocation7], 4294966272  ;;  %vm59_vm0 = vcmask 1047648   ;;  %v471_v0 = vmov 0.0   ;;  %vm472_vm1 = vmmov 0   ;;  %v64_v1 = vld [vmem:[%s565_s1] sm:$0xff]  ;;  %v309_v39 = vstv %s571_s7 }
  0x26   :  { %356 = vmatprep.subr.bf16.mxu0 %v471_v0  ;;  %60 = vst.msk [vmem:[#allocation2] sm:$0xff] %vm59_vm0, %v471_v0  ;;  %376 = vmatprep.subr.bf16.mxu1 %v471_v0  ;;  %s473_s10 = smov 8   ;;  %v403_v2 = vld [vmem:[#allocation4] sm:$0xff]   ;;  %v404_v3 = vld [vmem:[#allocation4 + $0x8] sm:$0xff]   ;;  %vm62_vm2 = vcmask 64512   ;;  %v61_v4 = vld [vmem:[%s564_s0] sm:$0xff] }
  0x27   :  { %372 = vmatprep.mubr.msk.bf16.mxu0 %vm472_vm1, %v471_v0  ;;  %392 = vmatprep.mubr.msk.bf16.mxu1 %vm472_vm1, %v471_v0  ;;  %v405_v5 = vld [vmem:[#allocation4 + $0x10] sm:$0xff]   ;;  %63 = vst.msk [vmem:[#allocation2] sm:$0xff] %vm62_vm2, %v61_v4  ;;  %v411_v6 = vld [vmem:[#allocation6] sm:$0xff]   ;;  %v406_v7 = vld [vmem:[#allocation4 + $0x18] sm:$0xff]   ;;  %vm69_vm3 = vcmask 97344   ;;  %vm311_vm4 = vcmask 7168  }
  0x28   :  { %66 = vrot.lane.b32.xlu0 %v64_v1, %s473_s10  ;;  %357 = vmatpush3.bf16.msra.mxu0 %v403_v2  ;;  %v412_v8 = vld [vmem:[#allocation6 + $0x8] sm:$0xff]   ;;  %v407_v9 = vld [vmem:[#allocation4 + $0x20] sm:$0xff]   ;;  %v413_v10 = vld [vmem:[#allocation6 + $0x10] sm:$0xff]  }
  0x29   :  { %358 = vmatprep.subr.bf16.mxu0 %v471_v0  ;;  %377 = vmatpush3.bf16.msra.mxu1 %v411_v6  ;;  %v408_v11 = vld [vmem:[#allocation4 + $0x28] sm:$0xff]   ;;  %v414_v12 = vld [vmem:[#allocation6 + $0x18] sm:$0xff]   ;;  %v409_v13 = vld [vmem:[#allocation4 + $0x30] sm:$0xff]  }
  0x2a   :  { %378 = vmatprep.subr.bf16.mxu1 %v471_v0  ;;  %v415_v14 = vld [vmem:[#allocation6 + $0x20] sm:$0xff]   ;;  %v410_v15 = vld [vmem:[#allocation4 + $0x38] sm:$0xff]   ;;  %v416_v16 = vld [vmem:[#allocation6 + $0x28] sm:$0xff]  }
  0x2b   :  { %v417_v20 = vld [vmem:[#allocation6 + $0x30] sm:$0xff]   ;;  %v418_v21 = vld [vmem:[#allocation6 + $0x38] sm:$0xff]  }
  0x2c   :  { %359 = vmatpush3.bf16.msra.mxu0 %v404_v3  ;;  %v319_v22 = vld [vmem:[%s567_s3] ss:$0 sm:$0xff] }
  0x2d   :  { %360 = vmatprep.subr.bf16.mxu0 %v471_v0  ;;  %379 = vmatpush3.bf16.msra.mxu1 %v412_v8  ;;  %v328_v30 = vld [vmem:[%s569_s5] ss:$0 sm:$0xff] }
  0x2e   :  { %380 = vmatprep.subr.bf16.mxu1 %v471_v0  ;;  %v337_v35 = vld [vmem:[%s570_s6] ss:$0 sm:$0xff] }
  0x30   :  { %361 = vmatpush3.bf16.msra.mxu0 %v405_v5 }
  0x31   :  { %362 = vmatprep.subr.bf16.mxu0 %v471_v0  ;;  %381 = vmatpush3.bf16.msra.mxu1 %v413_v10 }
  0x32   :  { %382 = vmatprep.subr.bf16.mxu1 %v471_v0 }
  0x34   :  { %363 = vmatpush3.bf16.msra.mxu0 %v406_v7 }
  0x35   :  { %364 = vmatprep.subr.bf16.mxu0 %v471_v0  ;;  %383 = vmatpush3.bf16.msra.mxu1 %v414_v12 }
  0x36   :  { %384 = vmatprep.subr.bf16.mxu1 %v471_v0 }
  0x38   :  { %365 = vmatpush3.bf16.msra.mxu0 %v407_v9 }
  0x39   :  { %366 = vmatprep.subr.bf16.mxu0 %v471_v0  ;;  %385 = vmatpush3.bf16.msra.mxu1 %v415_v14 }
  0x3a   :  { %386 = vmatprep.subr.bf16.mxu1 %v471_v0 }
  0x3c   :  { %367 = vmatpush3.bf16.msra.mxu0 %v408_v11 }
  0x3d   :  { %368 = vmatprep.subr.bf16.mxu0 %v471_v0  ;;  %387 = vmatpush3.bf16.msra.mxu1 %v416_v16 }
  0x3e   :  { %388 = vmatprep.subr.bf16.mxu1 %v471_v0 }
  0x40   :  { %369 = vmatpush3.bf16.msra.mxu0 %v409_v13 }
  0x41   :  { %370 = vmatprep.subr.bf16.mxu0 %v471_v0  ;;  %389 = vmatpush3.bf16.msra.mxu1 %v417_v20 }
  0x42   :  { %390 = vmatprep.subr.bf16.mxu1 %v471_v0 }
  0x44   :  { %371 = vmatpush3.bf16.msra.mxu0 %v410_v15 }
  0x45   :  { %391 = vmatpush3.bf16.msra.mxu1 %v418_v21 }
  0x9a   :  { %v67_v17 = vpop.permute.xlu0 %66 }
  0x9b   :  { %70 = vst.msk [vmem:[#allocation2] sm:$0xff] %vm69_vm3, %v67_v17 }
  0xa2   :  { %v71_v18 = vld [vmem:[#allocation2] sm:$0xff] }
  0xa3   :  { %v72_v19 = vpack.c.bf16 %v71_v18, %v71_v18 }
  0xa5   :  { %373 = vmatmul.mubr.bf16.vlgmr.msra.gmra.mrb[0].mxu0 %v72_v19 }
 0x178   :  { %v178_v23 = vpop.f32.mrb[0].mxu0 }
 0x179   :  { %v179_v24 = vadd.f32 %v319_v22, %v178_v23  ;;  %v374_v25 = vpop.f32.mrb[1].mxu0 }
 0x17a   :  { %v181_v26 = vpop.f32.mrb[2].mxu0 }
 0x17b   :  { %v184_v27 = vmax.f32 %v179_v24, 0.0  ;;  %v375_v28 = vpop.f32.mrb[3].mxu0 }
 0x17d   :  { %v185_v29 = vpack.c.bf16 %v184_v27, %v184_v27 }
 0x17f   :  { %393 = vmatmul.mubr.bf16.vlgmr.msra.gmra.mrb[0].mxu1 %v185_v29 }
 0x252   :  { %v291_v31 = vpop.f32.mrb[0].mxu1 }
 0x253   :  { %v292_v32 = vadd.f32 %v328_v30, %v291_v31  ;;  %v394_v33 = vpop.f32.mrb[1].mxu1 }
 0x254   :  { %v294_v34 = vpop.f32.mrb[2].mxu1 }
 0x255   :  { %v297_v36 = vmax.f32 %v292_v32, 0.0  ;;  %v395_v37 = vpop.f32.mrb[3].mxu1 }
 0x257   :  { %v305_v38 = vmul.f32 %v337_v35, %v297_v36 }
 0x259   :  { %306 = vadd.xlane.f32.xlu0 %v305_v38 }
 0x2e6   :  { %v307_v40 = vpop.xlane.xlu0 %306 }
 0x2e7   :  { %v310_v41 = vadd.f32 %v309_v39, %v307_v40 }
 0x2e9   :  { %312 = vst.msk [vmem:[%s572_s8] sm:$0xff] %vm311_vm4, %v310_v41 }
 0x2ea   :  { %317 = vsyncpa [#allocation5], 1 }
 0x2eb   :  { %318 = vsyncpa [#allocation7], 1 }

</bundles_post_ra>
